<compile_context>
chip_gen: v6e
topology: v6e:2x2x1
jax: 0.10.0
libtpu: 0.0.40
codegen_flags: <defaults>
</compile_context>

<pallas_src>
import jax
import jax.numpy as jnp
from jax.experimental import pallas as pl
from jax.experimental.pallas import tpu as pltpu

LN_EPS = 1e-5                 # PyTorch nn.LayerNorm default
IN_TRUE = 28 * 28             # 784 (kept unpadded; block = full last dim)
HID_TRUE, HID_PAD = 100, 128
OUT_TRUE, OUT_PAD = 10, 128   # OUT_PAD == HID_PAD so fc4 fits the stacked slab


def _round_up(n, m):
    return ((n + m - 1) // m) * m


def _pad2(a, rows, cols):
    return jnp.pad(a, ((0, rows - a.shape[0]), (0, cols - a.shape[1])))


def mlp_layernorm_kernel(x_ref, w1_ref, w234_ref, vec_ref, out_ref):
    inv_n = jnp.float32(1.0 / HID_TRUE)

    # Bias / gamma / beta rows of the packed (10, 128) f32 slab.
    b1, g1, be1 = vec_ref[0:1, :], vec_ref[1:2, :], vec_ref[2:3, :]
    b2, g2, be2 = vec_ref[3:4, :], vec_ref[4:5, :], vec_ref[5:6, :]
    b3, g3, be3 = vec_ref[6:7, :], vec_ref[7:8, :], vec_ref[8:9, :]
    b4 = vec_ref[9:10, :]

    def ln_relu(h, g, be):
        # Columns 100:128 of h are exactly zero, so full-lane sums equal the
        # true 100-feature sums; divide by 100 and use var = E[x^2] - mean^2.
        s = jnp.sum(h, axis=-1, keepdims=True)
        sq = jnp.sum(h * h, axis=-1, keepdims=True)
        mean = s * inv_n
        var = sq * inv_n - mean * mean
        inv = jax.lax.rsqrt(var + LN_EPS)
        h = (h - mean) * inv * g + be          # zero gamma/beta keep pads at 0
        return jnp.maximum(h, 0.0).astype(jnp.bfloat16)

    # fc1 (K = 784, unpadded) -> LN -> ReLU
    x = x_ref[...].astype(jnp.bfloat16)
    h = jnp.dot(x, w1_ref[...], preferred_element_type=jnp.float32) + b1
    h = ln_relu(h, g1, be1)
    # fc2 -> LN -> ReLU
    h = jnp.dot(h, w234_ref[0], preferred_element_type=jnp.float32) + b2
    h = ln_relu(h, g2, be2)
    # fc3 -> LN -> ReLU
    h = jnp.dot(h, w234_ref[1], preferred_element_type=jnp.float32) + b3
    h = ln_relu(h, g3, be3)
    # fc4: lane-dense (TB, 128) bf16 output; columns 10:128 are exactly zero.
    out = jnp.dot(h, w234_ref[2], preferred_element_type=jnp.float32) + b4
    out_ref[...] = out.astype(out_ref.dtype)


def prepare_params(params):
    """One-time packing of raw (in,out)-layout params into kernel form.

    Returns (w1p, w234, vecs):
      w1p : (784, 128) bf16
      w234: (3, 128, 128) bf16   -- fc2, fc3, fc4 (fc4 zero-padded to 128 cols)
      vecs: (10, 128) f32        -- rows b1,g1,be1, b2,g2,be2, b3,g3,be3, b4
    """
    (w1, b1, g1, be1, w2, b2, g2, be2, w3, b3, g3, be3, w4, b4) = params
    w1p = _pad2(w1, IN_TRUE, HID_PAD).astype(jnp.bfloat16)
    w234 = jnp.stack([
        _pad2(w2, HID_PAD, HID_PAD),
        _pad2(w3, HID_PAD, HID_PAD),
        _pad2(w4, HID_PAD, OUT_PAD),
    ]).astype(jnp.bfloat16)
    rows = (b1, g1, be1, b2, g2, be2, b3, g3, be3, b4)
    vecs = jnp.concatenate(
        [_pad2(r.reshape(1, -1), 1, HID_PAD) for r in rows], axis=0
    ).astype(jnp.float32)
    return w1p, w234, vecs


def mlp_layernorm_forward(x, prepped, *, batch_tile=1024, vmem_limit_bytes=None):
    """x: (B, 1, 28, 28) or (B, 784), f32 or bf16.  Returns (B, 10) f32.

    prepped: output of prepare_params (hoist it out of the hot path).
    batch_tile: rows per grid step; 1024-2048 recommended. VMEM at TB=1024 is
    ~11 MiB (fits every generation's default scoped limit); past TB~2048 set
    vmem_limit_bytes explicitly on v5e (16 MiB default) and keep TB <= ~2048
    on v7x (64 MiB physical / 32 MiB default scoped VMEM per TensorCore).
    """
    w1p, w234, vecs = prepped
    B = x.shape[0]
    x2 = x.reshape(B, -1)                     # free reshape, no pad, no cast
    assert x2.shape[1] == IN_TRUE
    if x2.dtype not in (jnp.float32, jnp.bfloat16):
        x2 = x2.astype(jnp.float32)

    # Tile choice: biggest tile <= batch_tile, 16-aligned (bf16 sublane pack),
    # capped so there are >= 2 grid steps when the batch allows it (v7x has
    # 2 TensorCores and only the "parallel" axis shards across them; the cap
    # costs one ~0.35us grid step on single-core v5e/v6e -- negligible).
    tb = min(_round_up(max(batch_tile, 16), 16),
             max(16, _round_up(pl.cdiv(B, 2), 16)))
    TB = B if tb >= B else tb                 # tiny batch: one full-batch block
    grid = (pl.cdiv(B, TB),)                  # ragged last block: OOB writes
                                              # masked, garbage rows sliced off

    x_spec = pl.BlockSpec((TB, IN_TRUE), lambda i: (i, 0))
    w1_spec = pl.BlockSpec((IN_TRUE, HID_PAD), lambda i: (0, 0))
    w234_spec = pl.BlockSpec((3, HID_PAD, HID_PAD), lambda i: (0, 0, 0))
    vec_spec = pl.BlockSpec((10, HID_PAD), lambda i: (0, 0))
    out_spec = pl.BlockSpec((TB, OUT_PAD), lambda i: (i, 0))

    out = pl.pallas_call(
        mlp_layernorm_kernel,
        out_shape=jax.ShapeDtypeStruct((B, OUT_PAD), jnp.bfloat16),
        grid_spec=pltpu.PrefetchScalarGridSpec(
            num_scalar_prefetch=0,
            grid=grid,
            in_specs=[x_spec, w1_spec, w234_spec, vec_spec],
            out_specs=out_spec,
        ),
        compiler_params=pltpu.CompilerParams(
            dimension_semantics=("parallel",),
            vmem_limit_bytes=vmem_limit_bytes,
        ),
    )(x2, w1p, w234, vecs)

    return out[:, :OUT_TRUE].astype(jnp.float32)


def init_params(key):
    """Deterministic init mimicking PyTorch defaults (uniform +-1/sqrt(fan_in)
    for Linear; ones/zeros for LayerNorm). Weights stored as (in, out)."""
    dims = [(28 * 28, 100), (100, 100), (100, 100), (100, 10)]
    keys = jax.random.split(key, 2 * len(dims))
    params = []
    for idx, (fan_in, fan_out) in enumerate(dims):
        bound = 1.0 / jnp.sqrt(jnp.float32(fan_in))
        w = jax.random.uniform(keys[2 * idx], (fan_in, fan_out),
                               minval=-bound, maxval=bound, dtype=jnp.float32)
        b = jax.random.uniform(keys[2 * idx + 1], (1, fan_out),
                               minval=-bound, maxval=bound, dtype=jnp.float32)
        params.append(w)
        params.append(b)
        if idx < 3:  # LayerNorm gamma/beta for layers 1-3
            params.append(jnp.ones((1, fan_out), jnp.float32))
            params.append(jnp.zeros((1, fan_out), jnp.float32))
    return tuple(params)  # (w1,b1,g1,be1, w2,b2,g2,be2, w3,b3,g3,be3, w4,b4)


def reference_forward(x, params):
    """Pure-JAX reference of the PyTorch forward (same bf16-input matmuls as
    the kernel, f32 accumulation / LN / ReLU) for tight validation."""
    (w1, b1, g1, be1, w2, b2, g2, be2, w3, b3, g3, be3, w4, b4) = params
    h = x.reshape(x.shape[0], -1).astype(jnp.float32)

    def mm(a, w):
        return jnp.dot(a.astype(jnp.bfloat16), w.astype(jnp.bfloat16),
                       preferred_element_type=jnp.float32)

    def ln(v, g, b):
        m = jnp.mean(v, axis=-1, keepdims=True)
        var = jnp.mean((v - m) ** 2, axis=-1, keepdims=True)
        return (v - m) / jnp.sqrt(var + LN_EPS) * g + b

    h = jax.nn.relu(ln(mm(h, w1) + b1, g1, be1))
    h = jax.nn.relu(ln(mm(h, w2) + b2, g2, be2))
    h = jax.nn.relu(ln(mm(h, w3) + b3, g3, be3))
    return mm(h, w4) + b4


if __name__ == "__main__":
    key = jax.random.PRNGKey(0)
    k_param, k_x = jax.random.split(key)

    params = init_params(k_param)
    prepped = prepare_params(params)          # one-time packing (not hot path)

    # Small MNIST-like NCHW input (single block, TB == B == 2).
    x = jax.random.normal(k_x, (2, 1, 28, 28), dtype=jnp.float32)
    out = jax.block_until_ready(mlp_layernorm_forward(x, prepped))
    assert out.shape == (2, 10), out.shape
    ref = reference_forward(x, params)
    assert jnp.allclose(out, ref, atol=1e-2, rtol=1e-2), \
        float(jnp.max(jnp.abs(out - ref)))

    # Multi-step grid + ragged last block (300 % 128 != 0), no batch padding.
    xb = jax.random.normal(jax.random.PRNGKey(1), (300, 1, 28, 28),
                           dtype=jnp.float32)
    outb = jax.block_until_ready(
        mlp_layernorm_forward(xb, prepped, batch_tile=128))
    assert outb.shape == (300, 10), outb.shape
    refb = reference_forward(xb, params)
    assert jnp.allclose(outb, refb, atol=1e-2, rtol=1e-2), \
        float(jnp.max(jnp.abs(outb - refb)))

    # Default tile path (>= 2 grid steps chosen automatically: TB=160, grid=2).
    outc = jax.block_until_ready(mlp_layernorm_forward(xb, prepped))
    assert outc.shape == (300, 10), outc.shape
    assert jnp.allclose(outc, refb, atol=1e-2, rtol=1e-2), \
        float(jnp.max(jnp.abs(outc - refb)))

    print("KERNEL_OK")
</pallas_src>

<mosaic_0001>
module attributes {stable_mosaic.version = 11 : i64} {
  func.func @mlp_layernorm_kernel(%arg0: i32, %arg1: memref<2x784xf32, #tpu.memory_space<vmem>>, %arg2: memref<784x128xbf16, #tpu.memory_space<vmem>>, %arg3: memref<3x128x128xbf16, #tpu.memory_space<vmem>>, %arg4: memref<10x128xf32, #tpu.memory_space<vmem>>, %arg5: memref<2x128xbf16, #tpu.memory_space<vmem>>) attributes {dimension_semantics = [#tpu.dimension_semantics<parallel>], iteration_bounds = array<i64: 1>, scalar_prefetch = 0 : i64, scratch_operands = 0 : i64, tpu.core_type = #tpu.core_type<tc>, window_params = [{transform_indices = @transform_0, window_bounds = array<i64: 2, 784>}, {pipeline_mode = #tpu.pipeline_mode<synchronous>, transform_indices = @transform_1, window_bounds = array<i64: 784, 128>}, {pipeline_mode = #tpu.pipeline_mode<synchronous>, transform_indices = @transform_2, window_bounds = array<i64: 3, 128, 128>}, {pipeline_mode = #tpu.pipeline_mode<synchronous>, transform_indices = @transform_3, window_bounds = array<i64: 10, 128>}, {transform_indices = @transform_4, window_bounds = array<i64: 2, 128>}]} {
    %c0 = arith.constant 0 : index
    %c0_0 = arith.constant 0 : index
    %0 = vector.load %arg4[%c0, %c0_0] : memref<10x128xf32, #tpu.memory_space<vmem>>, vector<1x128xf32>
    %c1 = arith.constant 1 : index
    %c0_1 = arith.constant 0 : index
    %1 = vector.load %arg4[%c1, %c0_1] : memref<10x128xf32, #tpu.memory_space<vmem>>, vector<1x128xf32>
    %c2 = arith.constant 2 : index
    %c0_2 = arith.constant 0 : index
    %2 = vector.load %arg4[%c2, %c0_2] : memref<10x128xf32, #tpu.memory_space<vmem>>, vector<1x128xf32>
    %c3 = arith.constant 3 : index
    %c0_3 = arith.constant 0 : index
    %3 = vector.load %arg4[%c3, %c0_3] : memref<10x128xf32, #tpu.memory_space<vmem>>, vector<1x128xf32>
    %c4 = arith.constant 4 : index
    %c0_4 = arith.constant 0 : index
    %4 = vector.load %arg4[%c4, %c0_4] : memref<10x128xf32, #tpu.memory_space<vmem>>, vector<1x128xf32>
    %c5 = arith.constant 5 : index
    %c0_5 = arith.constant 0 : index
    %5 = vector.load %arg4[%c5, %c0_5] : memref<10x128xf32, #tpu.memory_space<vmem>>, vector<1x128xf32>
    %c6 = arith.constant 6 : index
    %c0_6 = arith.constant 0 : index
    %6 = vector.load %arg4[%c6, %c0_6] : memref<10x128xf32, #tpu.memory_space<vmem>>, vector<1x128xf32>
    %c7 = arith.constant 7 : index
    %c0_7 = arith.constant 0 : index
    %7 = vector.load %arg4[%c7, %c0_7] : memref<10x128xf32, #tpu.memory_space<vmem>>, vector<1x128xf32>
    %c8 = arith.constant 8 : index
    %c0_8 = arith.constant 0 : index
    %8 = vector.load %arg4[%c8, %c0_8] : memref<10x128xf32, #tpu.memory_space<vmem>>, vector<1x128xf32>
    %c9 = arith.constant 9 : index
    %c0_9 = arith.constant 0 : index
    %9 = vector.load %arg4[%c9, %c0_9] : memref<10x128xf32, #tpu.memory_space<vmem>>, vector<1x128xf32>
    %c0_10 = arith.constant 0 : index
    %c0_11 = arith.constant 0 : index
    %10 = vector.load %arg1[%c0_10, %c0_11] : memref<2x784xf32, #tpu.memory_space<vmem>>, vector<2x784xf32>
    %11 = arith.truncf %10 : vector<2x784xf32> to vector<2x784xbf16>
    %c0_12 = arith.constant 0 : index
    %c0_13 = arith.constant 0 : index
    %12 = vector.load %arg2[%c0_12, %c0_13] : memref<784x128xbf16, #tpu.memory_space<vmem>>, vector<784x128xbf16>
    %cst = arith.constant dense<0.000000e+00> : vector<2x128xf32>
    %13 = tpu.matmul %11, %12, %cst {dimension_numbers = #tpu.dot_dimension_numbers<[1], [0], [0], [1], [0, 0, 1, 1], [], []>} : vector<2x784xbf16>, vector<784x128xbf16>, vector<2x128xf32> -> vector<2x128xf32>
    %14 = vector.broadcast %0 : vector<1x128xf32> to vector<2x128xf32>
    %15 = arith.addf %13, %14 : vector<2x128xf32>
    %cst_14 = arith.constant dense<0.000000e+00> : vector<2xf32>
    %16 = vector.multi_reduction <add>, %15, %cst_14 [1] : vector<2x128xf32> to vector<2xf32>
    %17 = vector.shape_cast %16 : vector<2xf32> to vector<2x1xf32>
    %18 = arith.mulf %15, %15 : vector<2x128xf32>
    %cst_15 = arith.constant dense<0.000000e+00> : vector<2xf32>
    %19 = vector.multi_reduction <add>, %18, %cst_15 [1] : vector<2x128xf32> to vector<2xf32>
    %20 = vector.shape_cast %19 : vector<2xf32> to vector<2x1xf32>
    %cst_16 = arith.constant 0.00999999977 : f32
    %21 = vector.broadcast %cst_16 : f32 to vector<2x1xf32>
    %22 = arith.mulf %17, %21 : vector<2x1xf32>
    %cst_17 = arith.constant 0.00999999977 : f32
    %23 = vector.broadcast %cst_17 : f32 to vector<2x1xf32>
    %24 = arith.mulf %20, %23 : vector<2x1xf32>
    %25 = arith.mulf %22, %22 : vector<2x1xf32>
    %26 = arith.subf %24, %25 : vector<2x1xf32>
    %cst_18 = arith.constant 9.99999974E-6 : f32
    %27 = vector.broadcast %cst_18 : f32 to vector<2x1xf32>
    %28 = arith.addf %26, %27 : vector<2x1xf32>
    %29 = math.rsqrt %28 : vector<2x1xf32>
    %30 = vector.broadcast %22 : vector<2x1xf32> to vector<2x128xf32>
    %31 = arith.subf %15, %30 : vector<2x128xf32>
    %32 = vector.broadcast %29 : vector<2x1xf32> to vector<2x128xf32>
    %33 = arith.mulf %31, %32 : vector<2x128xf32>
    %34 = vector.broadcast %1 : vector<1x128xf32> to vector<2x128xf32>
    %35 = arith.mulf %33, %34 : vector<2x128xf32>
    %36 = vector.broadcast %2 : vector<1x128xf32> to vector<2x128xf32>
    %37 = arith.addf %35, %36 : vector<2x128xf32>
    %cst_19 = arith.constant 0.000000e+00 : f32
    %38 = vector.broadcast %cst_19 : f32 to vector<2x128xf32>
    %39 = arith.maximumf %37, %38 : vector<2x128xf32>
    %40 = arith.truncf %39 : vector<2x128xf32> to vector<2x128xbf16>
    %c0_20 = arith.constant 0 : index
    %c0_21 = arith.constant 0 : index
    %c0_22 = arith.constant 0 : index
    %41 = vector.load %arg3[%c0_20, %c0_21, %c0_22] : memref<3x128x128xbf16, #tpu.memory_space<vmem>>, vector<1x128x128xbf16>
    %42 = vector.shape_cast %41 : vector<1x128x128xbf16> to vector<128x128xbf16>
    %cst_23 = arith.constant dense<0.000000e+00> : vector<2x128xf32>
    %43 = tpu.matmul %40, %42, %cst_23 {dimension_numbers = #tpu.dot_dimension_numbers<[1], [0], [0], [1], [0, 0, 1, 1], [], []>} : vector<2x128xbf16>, vector<128x128xbf16>, vector<2x128xf32> -> vector<2x128xf32>
    %44 = vector.broadcast %3 : vector<1x128xf32> to vector<2x128xf32>
    %45 = arith.addf %43, %44 : vector<2x128xf32>
    %cst_24 = arith.constant dense<0.000000e+00> : vector<2xf32>
    %46 = vector.multi_reduction <add>, %45, %cst_24 [1] : vector<2x128xf32> to vector<2xf32>
    %47 = vector.shape_cast %46 : vector<2xf32> to vector<2x1xf32>
    %48 = arith.mulf %45, %45 : vector<2x128xf32>
    %cst_25 = arith.constant dense<0.000000e+00> : vector<2xf32>
    %49 = vector.multi_reduction <add>, %48, %cst_25 [1] : vector<2x128xf32> to vector<2xf32>
    %50 = vector.shape_cast %49 : vector<2xf32> to vector<2x1xf32>
    %cst_26 = arith.constant 0.00999999977 : f32
    %51 = vector.broadcast %cst_26 : f32 to vector<2x1xf32>
    %52 = arith.mulf %47, %51 : vector<2x1xf32>
    %cst_27 = arith.constant 0.00999999977 : f32
    %53 = vector.broadcast %cst_27 : f32 to vector<2x1xf32>
    %54 = arith.mulf %50, %53 : vector<2x1xf32>
    %55 = arith.mulf %52, %52 : vector<2x1xf32>
    %56 = arith.subf %54, %55 : vector<2x1xf32>
    %cst_28 = arith.constant 9.99999974E-6 : f32
    %57 = vector.broadcast %cst_28 : f32 to vector<2x1xf32>
    %58 = arith.addf %56, %57 : vector<2x1xf32>
    %59 = math.rsqrt %58 : vector<2x1xf32>
    %60 = vector.broadcast %52 : vector<2x1xf32> to vector<2x128xf32>
    %61 = arith.subf %45, %60 : vector<2x128xf32>
    %62 = vector.broadcast %59 : vector<2x1xf32> to vector<2x128xf32>
    %63 = arith.mulf %61, %62 : vector<2x128xf32>
    %64 = vector.broadcast %4 : vector<1x128xf32> to vector<2x128xf32>
    %65 = arith.mulf %63, %64 : vector<2x128xf32>
    %66 = vector.broadcast %5 : vector<1x128xf32> to vector<2x128xf32>
    %67 = arith.addf %65, %66 : vector<2x128xf32>
    %cst_29 = arith.constant 0.000000e+00 : f32
    %68 = vector.broadcast %cst_29 : f32 to vector<2x128xf32>
    %69 = arith.maximumf %67, %68 : vector<2x128xf32>
    %70 = arith.truncf %69 : vector<2x128xf32> to vector<2x128xbf16>
    %c1_30 = arith.constant 1 : index
    %c0_31 = arith.constant 0 : index
    %c0_32 = arith.constant 0 : index
    %71 = vector.load %arg3[%c1_30, %c0_31, %c0_32] : memref<3x128x128xbf16, #tpu.memory_space<vmem>>, vector<1x128x128xbf16>
    %72 = vector.shape_cast %71 : vector<1x128x128xbf16> to vector<128x128xbf16>
    %cst_33 = arith.constant dense<0.000000e+00> : vector<2x128xf32>
    %73 = tpu.matmul %70, %72, %cst_33 {dimension_numbers = #tpu.dot_dimension_numbers<[1], [0], [0], [1], [0, 0, 1, 1], [], []>} : vector<2x128xbf16>, vector<128x128xbf16>, vector<2x128xf32> -> vector<2x128xf32>
    %74 = vector.broadcast %6 : vector<1x128xf32> to vector<2x128xf32>
    %75 = arith.addf %73, %74 : vector<2x128xf32>
    %cst_34 = arith.constant dense<0.000000e+00> : vector<2xf32>
    %76 = vector.multi_reduction <add>, %75, %cst_34 [1] : vector<2x128xf32> to vector<2xf32>
    %77 = vector.shape_cast %76 : vector<2xf32> to vector<2x1xf32>
    %78 = arith.mulf %75, %75 : vector<2x128xf32>
    %cst_35 = arith.constant dense<0.000000e+00> : vector<2xf32>
    %79 = vector.multi_reduction <add>, %78, %cst_35 [1] : vector<2x128xf32> to vector<2xf32>
    %80 = vector.shape_cast %79 : vector<2xf32> to vector<2x1xf32>
    %cst_36 = arith.constant 0.00999999977 : f32
    %81 = vector.broadcast %cst_36 : f32 to vector<2x1xf32>
    %82 = arith.mulf %77, %81 : vector<2x1xf32>
    %cst_37 = arith.constant 0.00999999977 : f32
    %83 = vector.broadcast %cst_37 : f32 to vector<2x1xf32>
    %84 = arith.mulf %80, %83 : vector<2x1xf32>
    %85 = arith.mulf %82, %82 : vector<2x1xf32>
    %86 = arith.subf %84, %85 : vector<2x1xf32>
    %cst_38 = arith.constant 9.99999974E-6 : f32
    %87 = vector.broadcast %cst_38 : f32 to vector<2x1xf32>
    %88 = arith.addf %86, %87 : vector<2x1xf32>
    %89 = math.rsqrt %88 : vector<2x1xf32>
    %90 = vector.broadcast %82 : vector<2x1xf32> to vector<2x128xf32>
    %91 = arith.subf %75, %90 : vector<2x128xf32>
    %92 = vector.broadcast %89 : vector<2x1xf32> to vector<2x128xf32>
    %93 = arith.mulf %91, %92 : vector<2x128xf32>
    %94 = vector.broadcast %7 : vector<1x128xf32> to vector<2x128xf32>
    %95 = arith.mulf %93, %94 : vector<2x128xf32>
    %96 = vector.broadcast %8 : vector<1x128xf32> to vector<2x128xf32>
    %97 = arith.addf %95, %96 : vector<2x128xf32>
    %cst_39 = arith.constant 0.000000e+00 : f32
    %98 = vector.broadcast %cst_39 : f32 to vector<2x128xf32>
    %99 = arith.maximumf %97, %98 : vector<2x128xf32>
    %100 = arith.truncf %99 : vector<2x128xf32> to vector<2x128xbf16>
    %c2_40 = arith.constant 2 : index
    %c0_41 = arith.constant 0 : index
    %c0_42 = arith.constant 0 : index
    %101 = vector.load %arg3[%c2_40, %c0_41, %c0_42] : memref<3x128x128xbf16, #tpu.memory_space<vmem>>, vector<1x128x128xbf16>
    %102 = vector.shape_cast %101 : vector<1x128x128xbf16> to vector<128x128xbf16>
    %cst_43 = arith.constant dense<0.000000e+00> : vector<2x128xf32>
    %103 = tpu.matmul %100, %102, %cst_43 {dimension_numbers = #tpu.dot_dimension_numbers<[1], [0], [0], [1], [0, 0, 1, 1], [], []>} : vector<2x128xbf16>, vector<128x128xbf16>, vector<2x128xf32> -> vector<2x128xf32>
    %104 = vector.broadcast %9 : vector<1x128xf32> to vector<2x128xf32>
    %105 = arith.addf %103, %104 : vector<2x128xf32>
    %106 = arith.truncf %105 : vector<2x128xf32> to vector<2x128xbf16>
    %c0_44 = arith.constant 0 : index
    %c0_45 = arith.constant 0 : index
    %107 = vector.load %arg5[%c0_44, %c0_45] : memref<2x128xbf16, #tpu.memory_space<vmem>>, vector<2x128xbf16>
    tpu.vector_store %arg5[%c0_44, %c0_45], %106 {strides = array<i32>} : memref<2x128xbf16, #tpu.memory_space<vmem>>, vector<2x128xbf16>,
    return
  }
  func.func @transform_0(%arg0: i32) -> (i32, i32) {
    %c0_i32 = arith.constant 0 : i32
    %c0_i32_0 = arith.constant 0 : i32
    return %arg0, %c0_i32 : i32, i32
  }
  func.func @transform_1(%arg0: i32) -> (i32, i32) {
    %c0_i32 = arith.constant 0 : i32
    %c0_i32_0 = arith.constant 0 : i32
    %c0_i32_1 = arith.constant 0 : i32
    return %c0_i32, %c0_i32_0 : i32, i32
  }
  func.func @transform_2(%arg0: i32) -> (i32, i32, i32) {
    %c0_i32 = arith.constant 0 : i32
    %c0_i32_0 = arith.constant 0 : i32
    %c0_i32_1 = arith.constant 0 : i32
    %c0_i32_2 = arith.constant 0 : i32
    return %c0_i32, %c0_i32_0, %c0_i32_1 : i32, i32, i32
  }
  func.func @transform_3(%arg0: i32) -> (i32, i32) {
    %c0_i32 = arith.constant 0 : i32
    %c0_i32_0 = arith.constant 0 : i32
    %c0_i32_1 = arith.constant 0 : i32
    return %c0_i32, %c0_i32_0 : i32, i32
  }
  func.func @transform_4(%arg0: i32) -> (i32, i32) {
    %c0_i32 = arith.constant 0 : i32
    %c0_i32_0 = arith.constant 0 : i32
    return %arg0, %c0_i32 : i32, i32
  }
}

</mosaic_0001>

<bundles_post_ra>
// kernel: tpu_custom_call.1
= control target key start
LH: loop header
LB: loop body
LE: loop exit
PB: predicated region body
PF: predicated region fallthrough
CT: control target
= control target key end

     0   :  { %9 = vsyncpa [#allocation3], 0  ;;  %s1658_s0 = inlined_call_operand.hbm [shape: f32[2,784], index: 0, kind: input, shape index: {}]   ;;  %s1659_s1 = inlined_call_operand.hbm [shape: bf16[784,128], index: 1, kind: input, shape index: {}]   ;;  %s1660_s2 = inlined_call_operand.hbm [shape: bf16[3,128,128], index: 2, kind: input, shape index: {}]   ;;  %s1661_s3 = inlined_call_operand.hbm [shape: f32[10,128], index: 3, kind: input, shape index: {}]   ;;  %s1662_s4 = inlined_call_operand.hbm [shape: bf16[2,128], index: 4, kind: output, shape index: {}]  }
   0x1   :  { %10 = vsyncpa [#allocation6], 0 }
   0x2   :  { %11 = vsyncpa [#allocation9], 0 }
   0x3   :  { %12 = vsyncpa [#allocation4], 0  ;;  %s1566_s15 = smov [#allocation5]  }
   0x4   :  { %s28_s16 = sshll.u32 %s1566_s15, 4  ;;  %s29_s16 = int_to_ptr.vmem [resolvable:$true] %s28_s16 }
   0x5   :  { %s1466_s17 = scalar_lea.vmem %s29_s16, 6272  ;;  %p1471_p1 = scmp.lt.s32.totalorder %s29_s16, %s29_s16 }
   0x6   :  { %p1467_p0 = scmp.ne.s32.totalorder %s29_s16, %s1466_s17  ;;  %p1472_p2 = scmp.lt.s32.totalorder %s1466_s17, %s1466_s17 }
   0x8   :  { %p1473_p3 = por %p1472_p2, %p1471_p1 }
   0xa   :  { %p1474_p4 = pnand %p1473_p3, %p1467_p0 }
   0xc   :  { %1477 = shalt.err (!%p1474_p4)
}
   0xd   :  { %s1567_s18 = smov 64   ;;  %s1568_s19 = smov 4  }
   0xe   :  { %34 = dma.hbm_to_vmem [thread:$0]  %s1659_s1, 6272, %s29_s16, [#allocation6], %s1567_s18, %s1567_s18, %s1568_s19  }
   0xf   :  { %s1569_s22 = smov [#allocation2]   ;;  %s1570_s24 = smov [#allocation7]  }
  0x10   :  { %s19_s23 = sshll.u32 %s1569_s22, 4  ;;  %s40_s25 = sshll.u32 %s1570_s24, 4  ;;  %s20_s23 = int_to_ptr.vmem [resolvable:$true] %s19_s23  ;;  %s41_s25 = int_to_ptr.vmem [resolvable:$true] %s40_s25 }
  0x11   :  { %s1486_s26 = scalar_lea.vmem %s20_s23, 224  ;;  %p1491_p6 = scmp.lt.s32.totalorder %s20_s23, %s20_s23 }
  0x12   :  { %p1487_p5 = scmp.ne.s32.totalorder %s20_s23, %s1486_s26  ;;  %p1492_p7 = scmp.lt.s32.totalorder %s1486_s26, %s1486_s26 }
  0x14   :  { %p1493_p8 = por %p1492_p7, %p1491_p6 }
  0x16   :  { %p1494_p9 = pnand %p1493_p8, %p1487_p5 }
  0x18   :  { %1497 = shalt.err (!%p1494_p9)
}
  0x19   :  { %22 = dma.hbm_to_vmem [thread:$0]  %s1658_s0, 224, %s20_s23, [#allocation3]  }
  0x1a   :  { %s1506_s29 = scalar_lea.vmem %s41_s25, 3072  ;;  %p1511_p11 = scmp.lt.s32.totalorder %s41_s25, %s41_s25 }
  0x1b   :  { %p1507_p10 = scmp.ne.s32.totalorder %s41_s25, %s1506_s29  ;;  %p1512_p12 = scmp.lt.s32.totalorder %s1506_s29, %s1506_s29 }
  0x1d   :  { %p1513_p13 = por %p1512_p12, %p1511_p11 }
  0x1f   :  { %p1514_p0 = pnand %p1513_p13, %p1507_p10 }
  0x21   :  { %1517 = shalt.err (!%p1514_p0)
}
  0x22   :  { %46 = dma.hbm_to_vmem [thread:$0]  %s1660_s2, 3072, %s41_s25, [#allocation6], %s1567_s18, %s1567_s18, %s1568_s19  }
  0x23   :  { %s1571_s5 = smov [#allocation8]  }
  0x24   :  { %s52_s6 = sshll.u32 %s1571_s5, 4  ;;  %s53_s6 = int_to_ptr.vmem [resolvable:$true] %s52_s6 }
  0x25   :  { %s1526_s7 = scalar_lea.vmem %s53_s6, 256  ;;  %p1531_p2 = scmp.lt.s32.totalorder %s53_s6, %s53_s6 }
  0x26   :  { %p1527_p1 = scmp.ne.s32.totalorder %s53_s6, %s1526_s7  ;;  %p1532_p3 = scmp.lt.s32.totalorder %s1526_s7, %s1526_s7 }
  0x28   :  { %p1533_p4 = por %p1532_p3, %p1531_p2 }
  0x2a   :  { %p1534_p5 = pnand %p1533_p4, %p1527_p1 }
  0x2c   :  { %1537 = shalt.err (!%p1534_p5)
}
  0x2d   :  { %s1572_s0 = smov 128   ;;  %s1573_s8 = smov 8  }
  0x2e   :  { %58 = dma.hbm_to_vmem [thread:$0]  %s1661_s3, 256, %s53_s6, [#allocation9], %s1572_s0, %s1572_s0, %s1573_s8  }
  0x2f   :  { %1558 = dma.done.wait [#allocation3], 224  }
  0x30   :  { %1559 = vsyncadd [#allocation3], 4294967072 }
  0x31   :  { %1560 = dma.done.wait [#allocation6], 9344  }
  0x32   :  { %1561 = vsyncadd [#allocation6], 4294957952 }
  0x33   :  { %1562 = dma.done.wait [#allocation9], 256  }
  0x34   :  { %1563 = vsyncadd [#allocation9], 4294967040  ;;  %v1377_v0 = vld [vmem:[#allocation5 + $0x78] sm:$0xff]   ;;  %v1381_v4 = vld [vmem:[#allocation5 + $0x70] sm:$0xff]   ;;  %v1574_v21 = vmov 1983009808   ;;  %v90_v23 = vlaneseq }
  0x35   :  { %v1378_v1 = vld [vmem:[#allocation5 + $0x38] sm:$0xff]   ;;  %1204 = vmatprep.subr.bf16.mxu0 %v1377_v0  ;;  %v1382_v5 = vld [vmem:[#allocation5 + $0x30] sm:$0xff]   ;;  %v1385_v8 = vld [vmem:[#allocation5 + $0x68] sm:$0xff]   ;;  %v88_v22 = vunpack.c.l.s4 %v1574_v21  ;;  %v1575_v45 = vmov 0.0   ;;  %vm1576_vm0 = vmmov 0   ;;  %vm529_vm1 = vcmask 130048  }
  0x36   :  { %v1379_v2 = vld [vmem:[#allocation5 + $0xf8] sm:$0xff]   ;;  %1205 = vmatpush3.bf16.msra.mxu0 %v1378_v1  ;;  %v1383_v6 = vld [vmem:[#allocation5 + $0xf0] sm:$0xff]   ;;  %v1386_v9 = vld [vmem:[#allocation5 + $0x28] sm:$0xff]   ;;  %v91_v29 = vshrl.u32 %v90_v23, 7  ;;  %vm693_vm2 = vcmask 1041408   ;;  %s1577_s2 = smov [#allocation10]  }
  0x37   :  { %v1380_v3 = vld [vmem:[#allocation5 + $0xb8] sm:$0xff]   ;;  %1226 = vmatprep.subr.bf16.mxu1 %v1379_v2  ;;  %1206 = vmatprep.subr.bf16.mxu0 %v1381_v4  ;;  %v1384_v7 = vld [vmem:[#allocation5 + $0xb0] sm:$0xff]   ;;  %v1387_v10 = vld [vmem:[#allocation5 + $0xe8] sm:$0xff]   ;;  %v89_v28 = vunpack.c.0.s8 %v88_v22  ;;  %s1109_s3 = sshll.u32 %s1577_s2, 4  ;;  %s1110_s3 = int_to_ptr.vmem [resolvable:$true] %s1109_s3 }
  0x38   :  { %1227 = vmatpush3.bf16.msra.mxu1 %v1380_v3  ;;  %v1388_v11 = vld [vmem:[#allocation5 + $0xa8] sm:$0xff]   ;;  %v1389_v12 = vld [vmem:[#allocation5 + $0x60] sm:$0xff]   ;;  %v1393_v16 = vld [vmem:[#allocation5 + $0x58] sm:$0xff]   ;;  %s1538_s11 = scalar_lea.vmem %s1110_s3, 16  ;;  %s1542_s12 = scalar_lea.vmem %s1110_s3, 32 }
  0x39   :  { %1228 = vmatprep.subr.bf16.mxu1 %v1383_v6  ;;  %v1390_v13 = vld [vmem:[#allocation5 + $0x20] sm:$0xff]   ;;  %v1394_v17 = vld [vmem:[#allocation5 + $0x18] sm:$0xff]   ;;  %v1397_v20 = vld [vmem:[#allocation5 + $0x50] sm:$0xff]   ;;  %v92_v34 = vsub.s32 %v89_v28, %v91_v29  ;;  %p1539_p6 = scmp.ne.s32.totalorder %s1110_s3, %s1538_s11  ;;  %p1543_p7 = scmp.lt.s32.totalorder %s1110_s3, %s1110_s3 }
  0x3a   :  { %1207 = vmatpush3.bf16.msra.mxu0 %v1382_v5  ;;  %v1391_v14 = vld [vmem:[#allocation5 + $0xe0] sm:$0xff]   ;;  %v1395_v18 = vld [vmem:[#allocation5 + $0xd8] sm:$0xff]   ;;  %v1398_v24 = vld [vmem:[#allocation5 + $0x10] sm:$0xff]   ;;  %p1544_p8 = scmp.lt.s32.totalorder %s1542_s12, %s1538_s11 }
  0x3b   :  { %1208 = vmatprep.subr.bf16.mxu0 %v1385_v8  ;;  %v1392_v15 = vld [vmem:[#allocation5 + $0xa0] sm:$0xff]   ;;  %v1396_v19 = vld [vmem:[#allocation5 + $0x98] sm:$0xff]   ;;  %v1399_v25 = vld [vmem:[#allocation5 + $0xd0] sm:$0xff]  }
  0x3c   :  { %1229 = vmatpush3.bf16.msra.mxu1 %v1384_v7  ;;  %v1400_v26 = vld [vmem:[#allocation5 + $0x90] sm:$0xff]   ;;  %v1401_v27 = vld [vmem:[#allocation5 + $0x48] sm:$0xff]   ;;  %v1405_v33 = vld [vmem:[#allocation5 + $0x40] sm:$0xff]   ;;  %p1545_p9 = por %p1544_p8, %p1543_p7 }
  0x3d   :  { %1230 = vmatprep.subr.bf16.mxu1 %v1387_v10  ;;  %v1402_v30 = vld [vmem:[#allocation5 + $0x8] sm:$0xff]   ;;  %v1406_v35 = vld [vmem:[#allocation5] sm:$0xff]   ;;  %v82_v37 = vld [vmem:[#allocation2] sm:$0xff] }
  0x3e   :  { %1209 = vmatpush3.bf16.msra.mxu0 %v1386_v9  ;;  %v1403_v31 = vld [vmem:[#allocation5 + $0xc8] sm:$0xff]   ;;  %v1407_v36 = vld [vmem:[#allocation5 + $0xc0] sm:$0xff]   ;;  %v93_v38 = vrot.slane %v82_v37, %v92_v34  ;;  %v86_v40 = vcombine.high %v82_v37, %v82_v37  ;;  %v1409_v41 = vld [vmem:[#allocation5 + $0x178] sm:$0xff]   ;;  %p1546_p10 = pnand %p1545_p9, %p1539_p6 }
  0x3f   :  { %1210 = vmatprep.subr.bf16.mxu0 %v1389_v12  ;;  %v1404_v32 = vld [vmem:[#allocation5 + $0x88] sm:$0xff]   ;;  %v1408_v39 = vld [vmem:[#allocation5 + $0x80] sm:$0xff]   ;;  %v1411_v48 = vld [vmem:[#allocation5 + $0x138] sm:$0xff]  }
  0x40   :  { %1231 = vmatpush3.bf16.msra.mxu1 %v1388_v11  ;;  %v101_v42 = vcombine.high %v93_v38, %v93_v38  ;;  %v100_v43 = vrot.slane %v86_v40, %v92_v34  ;;  %v126_v44 = vpack.c.bf16 %v93_v38, %v93_v38  ;;  %v1412_v50 = vld [vmem:[#allocation5 + $0x170] sm:$0xff]   ;;  %v1414_v53 = vld [vmem:[#allocation5 + $0x168] sm:$0xff]   ;;  %v1416_v55 = vld [vmem:[#allocation5 + $0x160] sm:$0xff]  }
  0x41   :  { %1232 = vmatprep.subr.bf16.mxu1 %v1391_v14  ;;  %v1413_v52 = vld [vmem:[#allocation5 + $0x130] sm:$0xff]   ;;  %v1415_v54 = vld [vmem:[#allocation5 + $0x128] sm:$0xff]   ;;  %v1417_v56 = vld [vmem:[#allocation5 + $0x120] sm:$0xff]  }
  0x42   :  { %1211 = vmatpush3.bf16.msra.mxu0 %v1390_v13  ;;  %v127_v46 = vpack.c.bf16 %v101_v42, %v101_v42  ;;  %v102_v47 = vcombine.high %v100_v43, %v100_v43  ;;  %v128_v49 = vpack.c.bf16 %v100_v43, %v100_v43  ;;  %v1418_v57 = vld [vmem:[#allocation5 + $0x158] sm:$0xff]   ;;  %v1426_v58 = vld [vmem:[#allocation5 + $0x180] sm:$0xff]   ;;  %v1420_v63 = vld [vmem:[#allocation5 + $0x150] sm:$0xff]  }
  0x43   :  { %1212 = vmatprep.subr.bf16.mxu0 %v1393_v16  ;;  %v83_v59 = vld [vmem:[#allocation2 + $0x8] sm:$0x3f]  ;;  %v1421_v2 = vld [vmem:[#allocation5 + $0x110] sm:$0xff]   ;;  %v1422_v5 = vld [vmem:[#allocation5 + $0x148] sm:$0xff]  }
  0x44   :  { %1233 = vmatpush3.bf16.msra.mxu1 %v1392_v15  ;;  %565 = vmatprep.mubr.bf16.mxu0 %v127_v46  ;;  %v129_v51 = vpack.c.bf16 %v102_v47, %v102_v47  ;;  %v1419_v60 = vld [vmem:[#allocation5 + $0x118] sm:$0xff]   ;;  %v103_v61 = vcombine.high %v83_v59, %v83_v59  ;;  %v110_v62 = vrot.slane %v83_v59, %v92_v34  ;;  %v1423_v6 = vld [vmem:[#allocation5 + $0x108] sm:$0xff]   ;;  %v1424_v7 = vld [vmem:[#allocation5 + $0x140] sm:$0xff]  }
  0x45   :  { %1234 = vmatprep.subr.bf16.mxu1 %v1395_v18  ;;  %v1425_v8 = vld [vmem:[#allocation5 + $0x100] sm:$0xff]   ;;  %v1120_v23 = vld [vmem:[#allocation8] ss:$0 sm:$0xff]  ;;  %v1429_v38 = vld [vmem:[#allocation7 + $0x30] sm:$0xff]  }
  0x46   :  { %1213 = vmatpush3.bf16.msra.mxu0 %v1394_v17  ;;  %605 = vmatprep.mubr.bf16.mxu1 %v129_v51  ;;  %v117_v0 = vrot.slane %v103_v61, %v92_v34  ;;  %v118_v1 = vcombine.high %v110_v62, %v110_v62  ;;  %v130_v9 = vpack.c.bf16 %v110_v62, %v110_v62  ;;  %v1428_v37 = vld [vmem:[#allocation7 + $0x38] sm:$0xff]   ;;  %v1431_v40 = vld [vmem:[#allocation7 + $0x20] sm:$0xff]   ;;  %v1433_v42 = vld [vmem:[#allocation7 + $0x10] sm:$0xff]  }
  0x47   :  { %1214 = vmatprep.subr.bf16.mxu0 %v1397_v20  ;;  %v1434_v43 = vld [vmem:[#allocation7 + $0x8] sm:$0xff]   ;;  %v1173_v62 = vld [vmem:[#allocation8 + $0x3] ss:$0 sm:$0xff] }
  0x48   :  { %1235 = vmatpush3.bf16.msra.mxu1 %v1396_v19  ;;  %v131_v3 = vpack.c.bf16 %v118_v1, %v118_v1  ;;  %v132_v4 = vpack.c.bf16 %v117_v0, %v117_v0 }
  0x49   :  { %1236 = vmatprep.subr.bf16.mxu1 %v1399_v25 }
  0x4a   :  { %1215 = vmatpush3.bf16.msra.mxu0 %v1398_v24 }
  0x4b   :  { %1216 = vmatprep.subr.bf16.mxu0 %v1401_v27 }
  0x4c   :  { %1237 = vmatpush3.bf16.msra.mxu1 %v1400_v26 }
  0x4d   :  { %1238 = vmatprep.subr.bf16.mxu1 %v1403_v31 }
  0x4e   :  { %1217 = vmatpush3.bf16.msra.mxu0 %v1402_v30 }
  0x4f   :  { %1218 = vmatprep.subr.bf16.mxu0 %v1405_v33 }
  0x50   :  { %1239 = vmatpush3.bf16.msra.mxu1 %v1404_v32 }
  0x51   :  { %1240 = vmatprep.subr.bf16.mxu1 %v1407_v36 }
  0x52   :  { %1219 = vmatpush3.bf16.msra.mxu0 %v1406_v35 }
  0x53   :  { %1248 = vmatprep.subr.bf16.mxu0 %v1409_v41  ;;  %v1432_v41 = vld [vmem:[#allocation7 + $0x18] sm:$0xff]  }
  0x54   :  { %1241 = vmatpush3.bf16.msra.mxu1 %v1408_v39  ;;  %v1430_v39 = vld [vmem:[#allocation7 + $0x28] sm:$0xff]  }
  0x55   :  { %1299 = vmatprep.subr.bf16.mxu1 %v1575_v45  ;;  %566 = vmatmul.mubr.bf16.vlgmr.msra.gmra.mxu0 %v126_v44  ;;  %v1435_v44 = vld [vmem:[#allocation7] sm:$0xff]  }
  0x56   :  { %1249 = vmatpush3.bf16.msra.mxu0 %v1411_v48  ;;  %645 = vmatprep.mubr.bf16.mxu0 %v131_v3 }
  0x57   :  { %606 = vmatmul.mubr.bf16.vlgmr.msra.gmra.mxu1 %v128_v49  ;;  %1250 = vmatprep.subr.bf16.mxu0 %v1412_v50 }
  0x58   :  { %1301 = vmatprep.mubr.msk.bf16.mxu1 %vm1576_vm0, %v1575_v45  ;;  %1300 = vmatpush3.bf16.msra.mxu1 %v1426_v58 }
  0x59   :  { %1305 = vmatprep.subr.bf16.mxu1 %v1575_v45 }
  0x5a   :  { %1251 = vmatpush3.bf16.msra.mxu0 %v1413_v52 }
  0x5b   :  { %1252 = vmatprep.subr.bf16.mxu0 %v1414_v53 }
  0x5e   :  { %1253 = vmatpush3.bf16.msra.mxu0 %v1415_v54 }
  0x5f   :  { %1254 = vmatprep.subr.bf16.mxu0 %v1416_v55  ;;  %1302 = vmatmul.mubr.msk.bf16.vlgmr.msra.gmra.mxu1 %vm529_vm1, %v132_v4  ;;  %v1171_v55 = vld [vmem:[#allocation8 + $0x1] ss:$0 sm:$0xff] }
  0x60   :  { %1321 = vmatprep.mubr.msk.bf16.mxu1 %vm1576_vm0, %v1575_v45  ;;  %1306 = vmatpush3.bf16.msra.mxu1 %v1428_v37 }
  0x61   :  { %1307 = vmatprep.subr.bf16.mxu1 %v1575_v45 }
  0x62   :  { %1255 = vmatpush3.bf16.msra.mxu0 %v1417_v56 }
  0x63   :  { %1256 = vmatprep.subr.bf16.mxu0 %v1418_v57  ;;  %v1172_v57 = vld [vmem:[#allocation8 + $0x2] ss:$0 sm:$0xff] }
  0x64   :  { %1308 = vmatpush3.bf16.msra.mxu1 %v1429_v38 }
  0x65   :  { %1309 = vmatprep.subr.bf16.mxu1 %v1575_v45 }
  0x66   :  { %1257 = vmatpush3.bf16.msra.mxu0 %v1419_v60 }
  0x67   :  { %1258 = vmatprep.subr.bf16.mxu0 %v1420_v63 }
  0x68   :  { %1310 = vmatpush3.bf16.msra.mxu1 %v1430_v39 }
  0x69   :  { %1311 = vmatprep.subr.bf16.mxu1 %v1575_v45 }
  0x6a   :  { %1259 = vmatpush3.bf16.msra.mxu0 %v1421_v2 }
  0x6b   :  { %1260 = vmatprep.subr.bf16.mxu0 %v1422_v5 }
  0x6c   :  { %1312 = vmatpush3.bf16.msra.mxu1 %v1431_v40  ;;  %v1444_v40 = vld [vmem:[#allocation7 + $0xb8] sm:$0xff]  }
  0x6d   :  { %1313 = vmatprep.subr.bf16.mxu1 %v1575_v45 }
  0x6e   :  { %1261 = vmatpush3.bf16.msra.mxu0 %v1423_v6 }
  0x6f   :  { %1262 = vmatprep.subr.bf16.mxu0 %v1424_v7  ;;  %v1436_v7 = vld [vmem:[#allocation7 + $0x78] sm:$0xff]  }
  0x70   :  { %1314 = vmatpush3.bf16.msra.mxu1 %v1432_v41  ;;  %v1445_v41 = vld [vmem:[#allocation7 + $0xb0] sm:$0xff]  }
  0x71   :  { %1315 = vmatprep.subr.bf16.mxu1 %v1575_v45 }
  0x72   :  { %1263 = vmatpush3.bf16.msra.mxu0 %v1425_v8  ;;  %v1437_v8 = vld [vmem:[#allocation7 + $0x70] sm:$0xff]  }
  0x73   :  { %1325 = vmatprep.subr.bf16.mxu0 %v1575_v45 }
  0x74   :  { %1316 = vmatpush3.bf16.msra.mxu1 %v1433_v42  ;;  %v1446_v42 = vld [vmem:[#allocation7 + $0xa8] sm:$0xff]  }
  0x75   :  { %646 = vmatmul.mubr.bf16.vlgmr.msra.gmra.mxu0 %v130_v9  ;;  %1317 = vmatprep.subr.bf16.mxu1 %v1575_v45  ;;  %v1438_v9 = vld [vmem:[#allocation7 + $0x68] sm:$0xff]  }
  0x76   :  { %1341 = vmatprep.mubr.msk.bf16.mxu0 %vm1576_vm0, %v1575_v45  ;;  %1326 = vmatpush3.bf16.msra.mxu0 %v1436_v7 }
  0x77   :  { %1327 = vmatprep.subr.bf16.mxu0 %v1575_v45 }
  0x78   :  { %1318 = vmatpush3.bf16.msra.mxu1 %v1434_v43  ;;  %v1447_v43 = vld [vmem:[#allocation7 + $0xa0] sm:$0xff]  }
  0x79   :  { %1319 = vmatprep.subr.bf16.mxu1 %v1575_v45 }
  0x7a   :  { %1328 = vmatpush3.bf16.msra.mxu0 %v1437_v8 }
  0x7b   :  { %1329 = vmatprep.subr.bf16.mxu0 %v1575_v45 }
  0x7c   :  { %1320 = vmatpush3.bf16.msra.mxu1 %v1435_v44  ;;  %v1448_v44 = vld [vmem:[#allocation7 + $0x98] sm:$0xff]  }
  0x7d   :  { %1345 = vmatprep.subr.bf16.mxu1 %v1575_v45 }
  0x7e   :  { %1330 = vmatpush3.bf16.msra.mxu0 %v1438_v9 }
  0x7f   :  { %1331 = vmatprep.subr.bf16.mxu0 %v1575_v45 }
 0x115   :  { %v1220_v10 = vpop.f32.mrf.mxu0 }
 0x117   :  { %v1221_v11 = vpop.f32.mrf.mxu0  ;;  %v1242_v12 = vpop.f32.mrf.mxu1 }
 0x118   :  { %v1222_v22 = vadd.f32 %v1221_v11, %v1220_v10  ;;  %v1439_v10 = vld [vmem:[#allocation7 + $0x60] sm:$0xff]   ;;  %v1440_v11 = vld [vmem:[#allocation7 + $0x58] sm:$0xff]  }
 0x119   :  { %v1223_v13 = vpop.f32.mrf.mxu0  ;;  %v1243_v14 = vpop.f32.mrf.mxu1  ;;  %1332 = vmatpush3.bf16.msra.mxu0 %v1439_v10 }
 0x11a   :  { %v568_v24 = vadd.f32 %v1222_v22, %v1120_v23  ;;  %v1244_v25 = vadd.f32 %v1243_v14, %v1242_v12  ;;  %1333 = vmatprep.subr.bf16.mxu0 %v1575_v45  ;;  %v1441_v12 = vld [vmem:[#allocation7 + $0x50] sm:$0xff]   ;;  %v1442_v13 = vld [vmem:[#allocation7 + $0x48] sm:$0xff]   ;;  %v1443_v14 = vld [vmem:[#allocation7 + $0x40] sm:$0xff]  }
 0x11b   :  { %v1224_v15 = vpop.f32.mrf.mxu0  ;;  %v1245_v16 = vpop.f32.mrf.mxu1 }
 0x11c   :  { %v608_v28 = vadd.f32 %v1244_v25, %v568_v24  ;;  %v1182_v24 = vld [vmem:[#allocation8 + $0x4] ss:$0 sm:$0xff] }
 0x11d   :  { %v1246_v17 = vpop.f32.mrf.mxu1  ;;  %1334 = vmatpush3.bf16.msra.mxu0 %v1440_v11 }
 0x11e   :  { %1335 = vmatprep.subr.bf16.mxu0 %v1575_v45 }
 0x11f   :  { %v687_v18 = vpop.f32.mrf.mxu1 }
 0x121   :  { %v1303_v19 = vpop.f32.mrf.mxu1  ;;  %1336 = vmatpush3.bf16.msra.mxu0 %v1441_v12 }
 0x122   :  { %1337 = vmatprep.subr.bf16.mxu0 %v1575_v45 }
 0x123   :  { %v690_v20 = vpop.f32.mrf.mxu1 }
 0x125   :  { %v1304_v21 = vpop.f32.mrf.mxu1  ;;  %1338 = vmatpush3.bf16.msra.mxu0 %v1442_v13 }
 0x126   :  { %1339 = vmatprep.subr.bf16.mxu0 %v1575_v45 }
 0x129   :  { %1340 = vmatpush3.bf16.msra.mxu0 %v1443_v14 }
 0x135   :  { %v1264_v26 = vpop.f32.mrf.mxu0 }
 0x137   :  { %v1265_v27 = vpop.f32.mrf.mxu0 }
 0x138   :  { %v1266_v29 = vadd.f32 %v1265_v27, %v1264_v26  ;;  %v1183_v26 = vld [vmem:[#allocation8 + $0x5] ss:$0 sm:$0xff] }
 0x139   :  { %v1267_v30 = vpop.f32.mrf.mxu0 }
 0x13a   :  { %v648_v31 = vadd.f32 %v1266_v29, %v608_v28 }
 0x13b   :  { %v1268_v32 = vpop.f32.mrf.mxu0 }
 0x13c   :  { %v688_v33 = vadd.f32 %v687_v18, %v648_v31  ;;  %v1184_v31 = vld [vmem:[#allocation8 + $0x6] ss:$0 sm:$0xff] }
 0x13e   :  { %v694_v34 = vsel %vm693_vm2, %v688_v33, 0.0  ;;  %v697_v35 = vmul.f32 %v688_v33, %v688_v33 }
 0x13f   :  { %695 = vadd.xlane.f32.xlu0 %v694_v34 }
 0x140   :  { %v698_v36 = vsel %vm693_vm2, %v697_v35, 0.0 }
 0x143   :  { %699 = vadd.xlane.f32.xlu0 %v698_v36 }
 0x1c8   :  { %v696_v46 = vpop.xlane.xlu0 %695 }
 0x1c9   :  { %v701_v47 = vmul.f32 0.01, %v696_v46  ;;  %v1449_v46 = vld [vmem:[#allocation7 + $0x90] sm:$0xff]  }
 0x1cb   :  { %v703_v49 = vmul.f32 %v701_v47, %v701_v47  ;;  %v707_v53 = vsub.f32 %v688_v33, %v701_v47  ;;  %v1450_v47 = vld [vmem:[#allocation7 + $0x88] sm:$0xff]  }
 0x1cc   :  { %v700_v48 = vpop.xlane.xlu0 %699 }
 0x1cd   :  { %v702_v50 = vmul.f32 0.01, %v700_v48  ;;  %v1451_v48 = vld [vmem:[#allocation7 + $0x80] sm:$0xff]  }
 0x1cf   :  { %v704_v51 = vsub.f32 %v702_v50, %v703_v49 }
 0x1d1   :  { %v705_v52 = vadd.f32 1e-05, %v704_v51 }
 0x1d3   :  { %1452 = vrsqrt.f32 %v705_v52 }
 0x1e0   :  { %v1453_v54 = vpop.eup %1452 }
 0x1e1   :  { %v708_v56 = vmul.f32 %v1453_v54, %v707_v53 }
 0x1e3   :  { %v713_v58 = vmul.f32 %v1171_v55, %v708_v56 }
 0x1e5   :  { %v718_v59 = vadd.f32 %v1172_v57, %v713_v58  ;;  %v1193_v58 = vld [vmem:[#allocation8 + $0x7] ss:$0 sm:$0xff] }
 0x1e7   :  { %v719_v60 = vmax.f32 %v718_v59, 0.0 }
 0x1e9   :  { %v720_v61 = vpack.c.bf16 %v719_v60, %v719_v60  ;;  %v1194_v60 = vld [vmem:[#allocation8 + $0x8] ss:$0 sm:$0xff] }
 0x1eb   :  { %1322 = vmatmul.mubr.bf16.vlgmr.msra.gmra.mxu1 %v720_v61 }
 0x1ec   :  { %1361 = vmatprep.mubr.msk.bf16.mxu1 %vm1576_vm0, %v1575_v45  ;;  %1346 = vmatpush3.bf16.msra.mxu1 %v1444_v40 }
 0x1ed   :  { %1347 = vmatprep.subr.bf16.mxu1 %v1575_v45 }
 0x1f0   :  { %1348 = vmatpush3.bf16.msra.mxu1 %v1445_v41 }
 0x1f1   :  { %1349 = vmatprep.subr.bf16.mxu1 %v1575_v45 }
 0x1f4   :  { %1350 = vmatpush3.bf16.msra.mxu1 %v1446_v42 }
 0x1f5   :  { %1351 = vmatprep.subr.bf16.mxu1 %v1575_v45 }
 0x1f8   :  { %1352 = vmatpush3.bf16.msra.mxu1 %v1447_v43 }
 0x1f9   :  { %1353 = vmatprep.subr.bf16.mxu1 %v1575_v45 }
 0x1fc   :  { %1354 = vmatpush3.bf16.msra.mxu1 %v1448_v44 }
 0x1fd   :  { %1355 = vmatprep.subr.bf16.mxu1 %v1575_v45 }
 0x200   :  { %1356 = vmatpush3.bf16.msra.mxu1 %v1449_v46 }
 0x201   :  { %1357 = vmatprep.subr.bf16.mxu1 %v1575_v45 }
 0x204   :  { %1358 = vmatpush3.bf16.msra.mxu1 %v1450_v47 }
 0x205   :  { %1359 = vmatprep.subr.bf16.mxu1 %v1575_v45  ;;  %v1195_v45 = vld [vmem:[#allocation8 + $0x9] ss:$0 sm:$0xff] }
 0x208   :  { %1360 = vmatpush3.bf16.msra.mxu1 %v1451_v48 }
 0x2ab   :  { %v823_v63 = vpop.f32.mrf.mxu1 }
 0x2ac   :  { %v824_v0 = vadd.f32 %v1173_v62, %v823_v63 }
 0x2ad   :  { %v1323_v1 = vpop.f32.mrf.mxu1 }
 0x2ae   :  { %v829_v2 = vsel %vm693_vm2, %v824_v0, 0.0  ;;  %v832_v3 = vmul.f32 %v824_v0, %v824_v0 }
 0x2af   :  { %830 = vadd.xlane.f32.xlu1 %v829_v2  ;;  %v826_v4 = vpop.f32.mrf.mxu1 }
 0x2b0   :  { %v833_v6 = vsel %vm693_vm2, %v832_v3, 0.0 }
 0x2b1   :  { %v1324_v5 = vpop.f32.mrf.mxu1 }
 0x2b3   :  { %834 = vadd.xlane.f32.xlu1 %v833_v6 }
 0x338   :  { %v831_v15 = vpop.xlane.xlu1 %830 }
 0x339   :  { %v836_v16 = vmul.f32 0.01, %v831_v15 }
 0x33b   :  { %v838_v18 = vmul.f32 %v836_v16, %v836_v16  ;;  %v842_v22 = vsub.f32 %v824_v0, %v836_v16 }
 0x33c   :  { %v835_v17 = vpop.xlane.xlu1 %834 }
 0x33d   :  { %v837_v19 = vmul.f32 0.01, %v835_v17 }
 0x33f   :  { %v839_v20 = vsub.f32 %v837_v19, %v838_v18 }
 0x341   :  { %v840_v21 = vadd.f32 1e-05, %v839_v20 }
 0x343   :  { %1454 = vrsqrt.f32 %v840_v21 }
 0x350   :  { %v1455_v23 = vpop.eup %1454 }
 0x351   :  { %v843_v25 = vmul.f32 %v1455_v23, %v842_v22 }
 0x353   :  { %v848_v27 = vmul.f32 %v1182_v24, %v843_v25 }
 0x355   :  { %v853_v28 = vadd.f32 %v1183_v26, %v848_v27 }
 0x357   :  { %v854_v29 = vmax.f32 %v853_v28, 0.0 }
 0x359   :  { %v855_v30 = vpack.c.bf16 %v854_v29, %v854_v29 }
 0x35b   :  { %1342 = vmatmul.mubr.bf16.vlgmr.msra.gmra.mxu0 %v855_v30 }
 0x41b   :  { %v959_v32 = vpop.f32.mrf.mxu0 }
 0x41c   :  { %v960_v33 = vadd.f32 %v1184_v31, %v959_v32 }
 0x41d   :  { %v1343_v34 = vpop.f32.mrf.mxu0 }
 0x41e   :  { %v965_v35 = vsel %vm693_vm2, %v960_v33, 0.0  ;;  %v968_v36 = vmul.f32 %v960_v33, %v960_v33 }
 0x41f   :  { %966 = vadd.xlane.f32.xlu0 %v965_v35  ;;  %v962_v37 = vpop.f32.mrf.mxu0 }
 0x420   :  { %v969_v38 = vsel %vm693_vm2, %v968_v36, 0.0 }
 0x421   :  { %970 = vadd.xlane.f32.xlu1 %v969_v38  ;;  %v1344_v39 = vpop.f32.mrf.mxu0 }
 0x4a8   :  { %v967_v49 = vpop.xlane.xlu0 %966 }
 0x4a9   :  { %v972_v50 = vmul.f32 0.01, %v967_v49 }
 0x4aa   :  { %v971_v51 = vpop.xlane.xlu1 %970 }
 0x4ab   :  { %v974_v52 = vmul.f32 %v972_v50, %v972_v50  ;;  %v973_v53 = vmul.f32 0.01, %v971_v51  ;;  %v978_v56 = vsub.f32 %v960_v33, %v972_v50 }
 0x4ad   :  { %v975_v54 = vsub.f32 %v973_v53, %v974_v52 }
 0x4af   :  { %v976_v55 = vadd.f32 1e-05, %v975_v54 }
 0x4b1   :  { %1456 = vrsqrt.f32 %v976_v55 }
 0x4be   :  { %v1457_v57 = vpop.eup %1456 }
 0x4bf   :  { %v979_v59 = vmul.f32 %v1457_v57, %v978_v56 }
 0x4c1   :  { %v984_v61 = vmul.f32 %v1193_v58, %v979_v59 }
 0x4c3   :  { %v989_v62 = vadd.f32 %v1194_v60, %v984_v61 }
 0x4c5   :  { %v990_v63 = vmax.f32 %v989_v62, 0.0 }
 0x4c7   :  { %v991_v0 = vpack.c.bf16 %v990_v63, %v990_v63 }
 0x4c9   :  { %1362 = vmatmul.mubr.bf16.vlgmr.msra.gmra.mxu1 %v991_v0 }
 0x589   :  { %v1095_v1 = vpop.f32.mrf.mxu1 }
 0x58a   :  { %v1096_v2 = vadd.f32 %v1195_v45, %v1095_v1 }
 0x58b   :  { %v1363_v3 = vpop.f32.mrf.mxu1 }
 0x58c   :  { %v1101_v4 = vpack.c.bf16 %v1096_v2, %v1096_v2 }
 0x58d   :  { %v1098_v5 = vpop.f32.mrf.mxu1 }
 0x58e   :  { %1102 = vst [vmem:[#allocation10] sm:$0x1] %v1101_v4 }
 0x58f   :  { %v1364_v6 = vpop.f32.mrf.mxu1 }
 0x590   :  { %1549 = shalt.err (!%p1546_p10)
}
 0x591   :  { %1112 = dma.vmem_to_hbm [thread:$0]  %s1110_s3, 16, %s1662_s4, [#allocation4]  }
 0x592   :  { %1564 = dma.done.wait [#allocation4], 16  }
 0x593   :  { %1565 = vsyncadd [#allocation4], 4294967280 }
 0x594   :  { %1116 = vsyncpa [#allocation3], 1 }
 0x595   :  { %1117 = vsyncpa [#allocation6], 1 }
 0x596   :  { %1118 = vsyncpa [#allocation9], 1 }
 0x597   :  { %1119 = vsyncpa [#allocation4], 1 }

</bundles_post_ra>
